<compile_context>
chip_gen: v7x
topology: tpu7x:2x2x1
jax: 0.10.0
libtpu: 0.0.40
codegen_flags: <defaults>
</compile_context>

<pallas_src>
import jax
import jax.numpy as jnp
from jax.experimental import pallas as pl
from jax.experimental.pallas import tpu as pltpu


_LANE = 128
_PAD_LOGIT = -100.0          # sigmoid(-100) == 0 and bce(-100, 0) == 0 -> masked pixels are no-ops
_TILE_F32_BYTES = 1 << 20    # ~1 MiB of f32 per input tile


def _cdiv(a, b):
    return (a + b - 1) // b


def _round_up(a, b):
    return _cdiv(a, b) * b


def _make_stats_kernel(tr, tn, n_half, n_rows, n_cols, need_row_mask, need_col_mask):
    """Build the per-shape stats kernel.

    Refs seen by the kernel:
      x_ref:   (tr, tn) logits tile (any float dtype; upcast to f32 in-kernel)
      t_ref:   (tr, tn) 0/1 multi-label target tile
      out_ref: (1, tr, 4) f32, lanes = [tp, sum_sigmoid, sum_target, sum_bce]
      acc_ref: (tr, 4)  f32 VMEM scratch accumulator
    """

    def kernel(x_ref, t_ref, out_ref, acc_ref):
        s = pl.program_id(0)
        r = pl.program_id(1)
        n = pl.program_id(2)

        @pl.when(n == 0)
        def _():
            acc_ref[...] = jnp.zeros_like(acc_ref)

        x = x_ref[...].astype(jnp.float32)
        t = t_ref[...].astype(jnp.float32)

        if need_row_mask or need_col_mask:
            valid = None
            if need_col_mask:
                col0 = (s * n_half + n) * tn
                cols = jax.lax.broadcasted_iota(jnp.int32, (tr, tn), 1) + col0
                valid = cols < n_cols
            if need_row_mask:
                rows = jax.lax.broadcasted_iota(jnp.int32, (tr, tn), 0) + r * tr
                rmask = rows < n_rows
                valid = rmask if valid is None else jnp.logical_and(valid, rmask)
            # Padded-logit trick: masked pixels contribute exactly 0 to every stat.
            x = jnp.where(valid, x, _PAD_LOGIT)
            t = jnp.where(valid, t, 0.0)

        # sigmoid + stable BCE-with-logits from ONE tanh + ONE log:
        #   p = sigmoid(x) = 0.5 * (1 + tanh(x/2))                       (VPU after tanh)
        #   log(1 + exp(-|x|)) = -log(sigmoid(|x|)) = -log(0.5*(1+|u|))  (one EUP log)
        u = jnp.tanh(0.5 * x)
        p = 0.5 * (1.0 + u)
        log_term = -jnp.log(0.5 * (1.0 + jnp.abs(u)))
        bce = jnp.maximum(x, 0.0) - x * t + log_term

        tp = jnp.sum(p * t, axis=1, keepdims=True)    # true positives
        sp = jnp.sum(p, axis=1, keepdims=True)        # sum sigmoid
        st = jnp.sum(t, axis=1, keepdims=True)        # sum target
        sb = jnp.sum(bce, axis=1, keepdims=True)      # sum BCE
        acc_ref[...] += jnp.concatenate([tp, sp, st, sb], axis=1)

        @pl.when(n == pl.num_programs(2) - 1)
        def _():
            out_ref[0] = acc_ref[...]

    return kernel


def dc_and_bce_loss(net_output, target, smooth=1.0):
    """DC_and_BCE_loss forward with default kwargs (aggregate='sum').

    net_output: (B, C, *spatial) float logits (f32 or bf16)
    target:     (B, C, *spatial) 0/1 multi-label target, same shape as net_output
    """
    assert target.shape == net_output.shape, \
        "target must be multi-label, same shape as net_output"
    B, C = net_output.shape[0], net_output.shape[1]
    N = 1
    for d in net_output.shape[2:]:
        N *= int(d)
    R = B * C

    # No wrapper-side dtype cast: the kernel upcasts to f32 in VMEM, so bf16
    # inputs stream half the HBM bytes with no extra host-side pass.
    x = net_output.reshape(R, N)
    t = target.reshape(R, N)

    # ---- row tiling: fill the sublane axis with (b, c) rows ----
    if R >= 8:
        two_byte = (x.dtype.itemsize <= 2) and (t.dtype.itemsize <= 2)
        tr = 16 if (two_byte and R >= 16) else 8
    else:
        tr = R                                   # equal-to-full-dim block is allowed
    grid_rows = _cdiv(R, tr)
    r_pad = grid_rows * tr

    # ---- spatial tiling: ~1 MiB of f32 per input tile, lane-aligned ----
    tn_cap = max(_LANE, (_TILE_F32_BYTES // (tr * 4)) // _LANE * _LANE)
    tn = min(tn_cap, _round_up(N, _LANE))
    n_col_blocks = _cdiv(N, tn)

    # ---- split the reduction in two so both v7x TensorCores get work ----
    num_splits = 2 if n_col_blocks >= 2 else 1
    n_half = _cdiv(n_col_blocks, num_splits)
    last_col_block = n_col_blocks - 1

    need_row_mask = (r_pad != R)
    need_col_mask = (num_splits * n_half * tn != N)

    def in_index_map(s, r, n):
        # Clamp so ragged / duplicated trailing blocks never index past the
        # array; their contribution is zeroed by the in-kernel mask.
        return (r, jnp.minimum(s * n_half + n, last_col_block))

    kernel = _make_stats_kernel(tr, tn, n_half, R, N, need_row_mask, need_col_mask)

    stats = pl.pallas_call(
        kernel,
        out_shape=jax.ShapeDtypeStruct((num_splits, r_pad, 4), jnp.float32),
        grid_spec=pltpu.PrefetchScalarGridSpec(
            num_scalar_prefetch=0,
            grid=(num_splits, grid_rows, n_half),
            in_specs=[
                pl.BlockSpec((tr, tn), in_index_map),
                pl.BlockSpec((tr, tn), in_index_map),
            ],
            out_specs=pl.BlockSpec((1, tr, 4), lambda s, r, n: (s, r, 0)),
            scratch_shapes=[pltpu.VMEM((tr, 4), jnp.float32)],
        ),
        compiler_params=pltpu.CompilerParams(
            dimension_semantics=("parallel", "parallel", "arbitrary"),
            vmem_limit_bytes=32 * 1024 * 1024,
        ),
    )(x, t)

    stats = jnp.sum(stats, axis=0)[:R].reshape(B, C, 4)   # (B, C, 4)
    tp = stats[..., 0]
    fp = stats[..., 1] - tp          # sum(sigmoid) - tp
    fn = stats[..., 2] - tp          # sum(target)  - tp
    bce_sum = stats[..., 3]

    # ---- SoftDiceLoss(sigmoid, batch_dice=False, do_bg=True, smooth) ----
    nominator = 2.0 * tp + smooth
    denominator = 2.0 * tp + fp + fn + smooth
    dc = nominator / (denominator + 1e-8)
    dc_loss = -jnp.mean(dc)

    # ---- BCEWithLogitsLoss(reduction='mean') over all elements ----
    ce_loss = jnp.sum(bce_sum) / (R * N)

    # aggregate == 'sum'
    return ce_loss + dc_loss


if __name__ == "__main__":
    key = jax.random.PRNGKey(0)
    k1, k2 = jax.random.split(key)
    B, C, H, W = 2, 4, 16, 16
    net_output = jax.random.normal(k1, (B, C, H, W), dtype=jnp.float32)
    # multi-label (BRATS regions) target: same shape as net_output, values in {0, 1}
    target = jax.random.bernoulli(k2, 0.3, (B, C, H, W)).astype(jnp.float32)

    loss = dc_and_bce_loss(net_output, target)
    loss = jax.block_until_ready(loss)
    assert bool(jnp.isfinite(loss)), "loss is not finite"
    print("KERNEL_OK")
</pallas_src>

<mosaic_0001>
module attributes {stable_mosaic.version = 11 : i64} {
  func.func @kernel(%arg0: i32, %arg1: i32, %arg2: i32, %arg3: memref<8x256xf32, #tpu.memory_space<vmem>>, %arg4: memref<8x256xf32, #tpu.memory_space<vmem>>, %arg5: memref<1x8x4xf32, #tpu.memory_space<vmem>>, %arg6: memref<8x4xf32, #tpu.memory_space<vmem>>) attributes {dimension_semantics = [#tpu.dimension_semantics<parallel>, #tpu.dimension_semantics<parallel>, #tpu.dimension_semantics<arbitrary>], iteration_bounds = array<i64: 1, 1, 1>, scalar_prefetch = 0 : i64, scratch_operands = 1 : i64, tpu.core_type = #tpu.core_type<tc>, window_params = [{transform_indices = @transform_0, window_bounds = array<i64: 8, 256>}, {transform_indices = @transform_1, window_bounds = array<i64: 8, 256>}, {transform_indices = @transform_2, window_bounds = array<i64: 1, 8, 4>}]} {
    %c0_i32 = arith.constant 0 : i32
    %0 = arith.cmpi eq, %arg2, %c0_i32 : i32
    %1 = arith.extui %0 : i1 to i32
    %c0_i32_0 = arith.constant 0 : i32
    %2 = arith.cmpi ne, %1, %c0_i32_0 : i32
    scf.if %2 {
      %cst_20 = arith.constant 0.000000e+00 : f32
      %41 = vector.broadcast %cst_20 : f32 to vector<8x4xf32>
      %c0_21 = arith.constant 0 : index
      %c0_22 = arith.constant 0 : index
      %42 = vector.load %arg6[%c0_21, %c0_22] : memref<8x4xf32, #tpu.memory_space<vmem>>, vector<8x4xf32>
      tpu.vector_store %arg6[%c0_21, %c0_22], %41 {strides = array<i32>} : memref<8x4xf32, #tpu.memory_space<vmem>>, vector<8x4xf32>,
    } else {
    }
    %c0 = arith.constant 0 : index
    %c0_1 = arith.constant 0 : index
    %3 = vector.load %arg3[%c0, %c0_1] : memref<8x256xf32, #tpu.memory_space<vmem>>, vector<8x256xf32>
    %c0_2 = arith.constant 0 : index
    %c0_3 = arith.constant 0 : index
    %4 = vector.load %arg4[%c0_2, %c0_3] : memref<8x256xf32, #tpu.memory_space<vmem>>, vector<8x256xf32>
    %cst = arith.constant 5.000000e-01 : f32
    %5 = vector.broadcast %cst : f32 to vector<8x256xf32>
    %6 = arith.mulf %5, %3 : vector<8x256xf32>
    %7 = math.tanh %6 : vector<8x256xf32>
    %cst_4 = arith.constant 1.000000e+00 : f32
    %8 = vector.broadcast %cst_4 : f32 to vector<8x256xf32>
    %9 = arith.addf %8, %7 : vector<8x256xf32>
    %cst_5 = arith.constant 5.000000e-01 : f32
    %10 = vector.broadcast %cst_5 : f32 to vector<8x256xf32>
    %11 = arith.mulf %10, %9 : vector<8x256xf32>
    %12 = math.absf %7 : vector<8x256xf32>
    %cst_6 = arith.constant 1.000000e+00 : f32
    %13 = vector.broadcast %cst_6 : f32 to vector<8x256xf32>
    %14 = arith.addf %13, %12 : vector<8x256xf32>
    %cst_7 = arith.constant 5.000000e-01 : f32
    %15 = vector.broadcast %cst_7 : f32 to vector<8x256xf32>
    %16 = arith.mulf %15, %14 : vector<8x256xf32>
    %17 = math.log %16 : vector<8x256xf32>
    %cst_8 = arith.constant 0.000000e+00 : f32
    %18 = vector.broadcast %cst_8 : f32 to vector<8x256xf32>
    %19 = arith.subf %18, %17 : vector<8x256xf32>
    %cst_9 = arith.constant 0.000000e+00 : f32
    %20 = vector.broadcast %cst_9 : f32 to vector<8x256xf32>
    %21 = arith.maximumf %3, %20 : vector<8x256xf32>
    %22 = arith.mulf %3, %4 : vector<8x256xf32>
    %23 = arith.subf %21, %22 : vector<8x256xf32>
    %24 = arith.addf %23, %19 : vector<8x256xf32>
    %25 = arith.mulf %11, %4 : vector<8x256xf32>
    %cst_10 = arith.constant dense<0.000000e+00> : vector<8xf32>
    %26 = vector.multi_reduction <add>, %25, %cst_10 [1] : vector<8x256xf32> to vector<8xf32>
    %27 = vector.shape_cast %26 : vector<8xf32> to vector<8x1xf32>
    %cst_11 = arith.constant dense<0.000000e+00> : vector<8xf32>
    %28 = vector.multi_reduction <add>, %11, %cst_11 [1] : vector<8x256xf32> to vector<8xf32>
    %29 = vector.shape_cast %28 : vector<8xf32> to vector<8x1xf32>
    %cst_12 = arith.constant dense<0.000000e+00> : vector<8xf32>
    %30 = vector.multi_reduction <add>, %4, %cst_12 [1] : vector<8x256xf32> to vector<8xf32>
    %31 = vector.shape_cast %30 : vector<8xf32> to vector<8x1xf32>
    %cst_13 = arith.constant dense<0.000000e+00> : vector<8xf32>
    %32 = vector.multi_reduction <add>, %24, %cst_13 [1] : vector<8x256xf32> to vector<8xf32>
    %33 = vector.shape_cast %32 : vector<8xf32> to vector<8x1xf32>
    %c0_14 = arith.constant 0 : index
    %c0_15 = arith.constant 0 : index
    %34 = vector.load %arg6[%c0_14, %c0_15] : memref<8x4xf32, #tpu.memory_space<vmem>>, vector<8x4xf32>
    %35 = tpu.concatenate %27, %29, %31, %33 in 1 : vector<8x1xf32>, vector<8x1xf32>, vector<8x1xf32>, vector<8x1xf32> -> vector<8x4xf32>
    %36 = arith.addf %34, %35 : vector<8x4xf32>
    %c0_16 = arith.constant 0 : index
    %c0_17 = arith.constant 0 : index
    %37 = vector.load %arg6[%c0_16, %c0_17] : memref<8x4xf32, #tpu.memory_space<vmem>>, vector<8x4xf32>
    tpu.vector_store %arg6[%c0_16, %c0_17], %36 {strides = array<i32>} : memref<8x4xf32, #tpu.memory_space<vmem>>, vector<8x4xf32>,
    %c0_i32_18 = arith.constant 0 : i32
    %38 = arith.cmpi eq, %arg2, %c0_i32_18 : i32
    %39 = arith.extui %38 : i1 to i32
    %c0_i32_19 = arith.constant 0 : i32
    %40 = arith.cmpi ne, %39, %c0_i32_19 : i32
    scf.if %40 {
      %c0_20 = arith.constant 0 : index
      %c0_21 = arith.constant 0 : index
      %41 = vector.load %arg6[%c0_20, %c0_21] : memref<8x4xf32, #tpu.memory_space<vmem>>, vector<8x4xf32>
      %c0_22 = arith.constant 0 : index
      %c0_23 = arith.constant 0 : index
      %c0_24 = arith.constant 0 : index
      %42 = vector.load %arg5[%c0_22, %c0_23, %c0_24] : memref<1x8x4xf32, #tpu.memory_space<vmem>>, vector<1x8x4xf32>
      %43 = vector.shape_cast %42 : vector<1x8x4xf32> to vector<8x4xf32>
      %44 = vector.shape_cast %41 : vector<8x4xf32> to vector<1x8x4xf32>
      tpu.vector_store %arg5[%c0_22, %c0_23, %c0_24], %44 {strides = array<i32>} : memref<1x8x4xf32, #tpu.memory_space<vmem>>, vector<1x8x4xf32>,
    } else {
    }
    return
  }
  func.func @transform_0(%arg0: i32, %arg1: i32, %arg2: i32) -> (i32, i32) {
    %c1_i32 = arith.constant 1 : i32
    %0 = arith.muli %arg0, %c1_i32 : i32
    %1 = arith.addi %0, %arg2 : i32
    %c0_i32 = arith.constant 0 : i32
    %2 = arith.minsi %1, %c0_i32 : i32
    %c0_i32_0 = arith.constant 0 : i32
    return %arg1, %2 : i32, i32
  }
  func.func @transform_1(%arg0: i32, %arg1: i32, %arg2: i32) -> (i32, i32) {
    %c1_i32 = arith.constant 1 : i32
    %0 = arith.muli %arg0, %c1_i32 : i32
    %1 = arith.addi %0, %arg2 : i32
    %c0_i32 = arith.constant 0 : i32
    %2 = arith.minsi %1, %c0_i32 : i32
    %c0_i32_0 = arith.constant 0 : i32
    return %arg1, %2 : i32, i32
  }
  func.func @transform_2(%arg0: i32, %arg1: i32, %arg2: i32) -> (i32, i32, i32) {
    %c0_i32 = arith.constant 0 : i32
    %c0_i32_0 = arith.constant 0 : i32
    return %arg0, %arg1, %c0_i32 : i32, i32, i32
  }
}

</mosaic_0001>

<bundles_post_ra>
// kernel: tpu_custom_call.1
= control target key start
LH: loop header
LB: loop body
LE: loop exit
PB: predicated region body
PF: predicated region fallthrough
CT: control target
= control target key end

     0   :  { %7 = vsyncpa [#allocation4], 0  ;;  %s239_s0 = inlined_call_operand.hbm [shape: f32[8,256], index: 0, kind: input, shape index: {}]   ;;  %s240_s1 = inlined_call_operand.hbm [shape: f32[8,256], index: 1, kind: input, shape index: {}]   ;;  %s241_s2 = inlined_call_operand.vmem [shape: f32[1,8,4], index: 2, kind: output, shape index: {}]  }
   0x1   :  { %8 = vsyncpa [#allocation6], 0  ;;  %s191_s9 = smov [#allocation3]   ;;  %s192_s11 = smov [#allocation5]  }
   0x2   :  { %s21_s10 = sshll.u32 %s191_s9, 4  ;;  %s37_s12 = sshll.u32 %s192_s11, 4  ;;  %s22_s10 = int_to_ptr.vmem [resolvable:$true] %s21_s10  ;;  %s38_s12 = int_to_ptr.vmem [resolvable:$true] %s37_s12 }
   0x3   :  { %s143_s15 = scalar_lea.hbm %s239_s0, 256 }
   0x4   :  { %p144_p0 = scmp.ne.s32.totalorder %s239_s0, %s143_s15  ;;  %p147_p1 = scmp.lt.u32.totalorder %s143_s15, %s239_s0 }
   0x6   :  { %p149_p2 = pnand %p147_p1, %p144_p0 }
   0x8   :  { %152 = shalt.err (!%p149_p2)
}
   0x9   :  { %s153_s20 = scalar_lea.vmem %s22_s10, 256  ;;  %p158_p4 = scmp.lt.s32.totalorder %s22_s10, %s22_s10 }
   0xa   :  { %p154_p3 = scmp.ne.s32.totalorder %s22_s10, %s153_s20  ;;  %p159_p5 = scmp.lt.s32.totalorder %s153_s20, %s153_s20 }
   0xc   :  { %p160_p6 = por %p159_p5, %p158_p4 }
   0xe   :  { %p161_p7 = pnand %p160_p6, %p154_p3 }
  0x10   :  { %164 = shalt.err (!%p161_p7)
}
  0x11   :  { %24 = dma.hbm_to_vmem [thread:$0]  %s239_s0, 256, %s22_s10, [#allocation4]  }
  0x12   :  { %s165_s25 = scalar_lea.hbm %s240_s1, 256 }
  0x13   :  { %p166_p8 = scmp.ne.s32.totalorder %s240_s1, %s165_s25  ;;  %p169_p9 = scmp.lt.u32.totalorder %s165_s25, %s240_s1 }
  0x15   :  { %p171_p10 = pnand %p169_p9, %p166_p8 }
  0x17   :  { %174 = shalt.err (!%p171_p10)
}
  0x18   :  { %s175_s30 = scalar_lea.vmem %s38_s12, 256  ;;  %p180_p12 = scmp.lt.s32.totalorder %s38_s12, %s38_s12 }
  0x19   :  { %p176_p11 = scmp.ne.s32.totalorder %s38_s12, %s175_s30  ;;  %p181_p13 = scmp.lt.s32.totalorder %s175_s30, %s175_s30 }
  0x1b   :  { %p182_p0 = por %p181_p13, %p180_p12 }
  0x1d   :  { %p183_p1 = pnand %p182_p0, %p176_p11 }
  0x1f   :  { %186 = shalt.err (!%p183_p1)
}
  0x20   :  { %40 = dma.hbm_to_vmem [thread:$0]  %s240_s1, 256, %s38_s12, [#allocation6]  }
  0x21   :  { %187 = dma.done.wait [#allocation4], 256  }
  0x22   :  { %188 = vsyncadd [#allocation4], 4294967040 }
  0x23   :  { %189 = dma.done.wait [#allocation6], 256  }
  0x24   :  { %190 = vsyncadd [#allocation6], 4294967040  ;;  %v61_v0 = vld [vmem:[#allocation3] sm:$0xff]  ;;  %v62_v1 = vld [vmem:[#allocation3 + $0x8] sm:$0xff]  ;;  %vm59_vm0 = vcmask 31744   ;;  %v193_v38 = vmov 0.0  }
  0x25   :  { %v63_v2 = vld [vmem:[#allocation5] sm:$0xff]  ;;  %v64_v3 = vld [vmem:[#allocation5 + $0x8] sm:$0xff]  ;;  %v65_v4 = vmul.f32 0.5, %v61_v0  ;;  %v66_v5 = vmul.f32 0.5, %v62_v1  ;;  %v85_v24 = vmax.f32 %v61_v0, 0.0  ;;  %v86_v26 = vmax.f32 %v62_v1, 0.0 }
  0x26   :  { %v101_v6 = vadd.f32 %v64_v3, %v63_v2  ;;  %v87_v23 = vmul.f32 %v63_v2, %v61_v0  ;;  %v88_v25 = vmul.f32 %v64_v3, %v62_v1  ;;  %60 = vst.msk [vmem:[#allocation2] sm:$0xff] %vm59_vm0, %v193_v38  ;;  %vm108_vm1 = vcmask 7168  }
  0x27   :  { %135 = vtanh.f32 %v65_v4  ;;  %vm110_vm2 = vcmask 15360   ;;  %vm112_vm3 = vcmask 23552  }
  0x28   :  { %137 = vtanh.f32 %v66_v5  ;;  %102 = vadd.xlane.f32.xlu1 %v101_v6  ;;  %v89_v30 = vsub.f32 %v85_v24, %v87_v23  ;;  %v90_v32 = vsub.f32 %v86_v26, %v88_v25 }
  0x2d   :  { %v107_v43 = vld [vmem:[#allocation2] sm:$0xff] }
  0x31   :  { %v136_v7 = vpop.eup %135 }
  0x32   :  { %v138_v8 = vpop.eup %137  ;;  %v69_v9 = vadd.f32 1.0, %v136_v7  ;;  %v73_v10 = vand.u32 2147483647, %v136_v7 }
  0x33   :  { %v70_v11 = vadd.f32 1.0, %v138_v8  ;;  %v74_v12 = vand.u32 2147483647, %v138_v8 }
  0x34   :  { %v71_v13 = vmul.f32 0.5, %v69_v9  ;;  %v75_v14 = vadd.f32 1.0, %v73_v10 }
  0x35   :  { %v72_v15 = vmul.f32 0.5, %v70_v11  ;;  %v76_v16 = vadd.f32 1.0, %v74_v12 }
  0x36   :  { %v93_v17 = vmul.f32 %v71_v13, %v63_v2  ;;  %v77_v18 = vmul.f32 0.5, %v75_v14 }
  0x37   :  { %v94_v19 = vmul.f32 %v72_v15, %v64_v3  ;;  %v78_v20 = vmul.f32 0.5, %v76_v16  ;;  %v98_v22 = vadd.f32 %v72_v15, %v71_v13 }
  0x38   :  { %139 = vlog2.f32 %v77_v18 }
  0x39   :  { %v95_v21 = vadd.f32 %v94_v19, %v93_v17  ;;  %141 = vlog2.f32 %v78_v20 }
  0x3b   :  { %96 = vadd.xlane.f32.xlu0 %v95_v21 }
  0x3f   :  { %99 = vadd.xlane.f32.xlu0 %v98_v22 }
  0x42   :  { %v140_v27 = vpop.eup %139 }
  0x43   :  { %v142_v28 = vpop.eup %141  ;;  %v80_v29 = vmul.f32 0.6931472, %v140_v27 }
  0x44   :  { %v82_v31 = vmul.f32 0.6931472, %v142_v28 }
  0x45   :  { %v83_v33 = vsub.f32 0.0, %v80_v29 }
  0x46   :  { %v84_v34 = vsub.f32 0.0, %v82_v31 }
  0x47   :  { %v91_v35 = vadd.f32 %v89_v30, %v83_v33 }
  0x48   :  { %v92_v36 = vadd.f32 %v90_v32, %v84_v34 }
  0x4a   :  { %v104_v37 = vadd.f32 %v92_v36, %v91_v35 }
  0x4c   :  { %105 = vadd.xlane.f32.xlu1 %v104_v37 }
  0xb5   :  { %v103_v41 = vpop.xlane.xlu1 %102 }
  0xc8   :  { %v97_v39 = vpop.xlane.xlu0 %96 }
  0xcc   :  { %v100_v40 = vpop.xlane.xlu0 %99 }
  0xcd   :  { %v109_v42 = vsel %vm108_vm1, %v97_v39, %v100_v40 }
  0xce   :  { %v111_v44 = vsel %vm110_vm2, %v109_v42, %v103_v41 }
  0xd9   :  { %v106_v45 = vpop.xlane.xlu1 %105 }
  0xda   :  { %v113_v46 = vsel %vm112_vm3, %v111_v44, %v106_v45 }
  0xdb   :  { %v114_v47 = vadd.f32 %v113_v46, %v107_v43 }
  0xdd   :  { %116 = vst.msk [vmem:[#allocation2] sm:$0xff] %vm59_vm0, %v114_v47 }
  0xe4   :  { %v120_v48 = vld [vmem:[#allocation2] sm:$0xff] }
  0xe5   :  { %121 = vst.msk [vmem:[%s241_s2] sm:$0xff] %vm59_vm0, %v120_v48 }
  0xe6   :  { %126 = vsyncpa [#allocation4], 1 }
  0xe7   :  { %127 = vsyncpa [#allocation6], 1 }

</bundles_post_ra>
